<compile_context>
chip_gen: v6e
topology: v6e:2x2x1
jax: 0.10.0
libtpu: 0.0.40
codegen_flags: <defaults>
</compile_context>

<pallas_src>
import jax
import jax.numpy as jnp
from jax.experimental import pallas as pl
from jax.experimental.pallas import tpu as pltpu


def se_kernel(x_ref, w1_ref, b1_ref, w2_ref, b2_ref, o_ref):
    # x block: (TB, C, HW)   w1: (C, Hid)  b1: (1, Hid)  w2: (Hid, C)  b2: (1, C)

    # Squeeze: global max over the spatial extent (AdaptiveMaxPool2d(1)).
    y = jnp.max(x_ref[...], axis=-1)                                   # (TB, C)

    # Excitation: Linear -> ReLU -> Linear -> Sigmoid (MXU matmuls, f32 accumulation).
    h = jnp.dot(y, w1_ref[...], preferred_element_type=jnp.float32) + b1_ref[...]
    h = jnp.maximum(h, 0.0)                                            # (TB, Hid)
    s = jnp.dot(h, w2_ref[...], preferred_element_type=jnp.float32) + b2_ref[...]
    s = jax.nn.sigmoid(s)                                              # (TB, C) f32
    s = s.astype(x_ref.dtype)

    # Scale: re-read x from VMEM (don't keep the whole tile live across the reduction)
    # and broadcast the channel gate over the spatial lanes.
    o_ref[...] = (x_ref[...] * s[:, :, None]).astype(o_ref.dtype)


def _tpu_topology():
    """(vmem_capacity_bytes, tensorcores_per_chip) with conservative fallbacks."""
    vmem_cap = 64 << 20                      # conservative (v7x per-TC) fallback
    try:
        vmem_cap = int(pltpu.get_tpu_info().vmem_capacity_bytes)
    except Exception:
        pass
    num_cores = 1                            # v5e / v6e: one TensorCore per chip
    try:
        kind = jax.devices()[0].device_kind.lower()
        if "v7" in kind:                     # v7x: two TensorCores per chip
            num_cores = 2
    except Exception:
        pass
    return vmem_cap, num_cores


def _choose_tb(B, per_batch_bytes, tile_budget_bytes, num_cores):
    """Batches per grid step: ~4 MiB x tile per step, capped by the VMEM budget
    (2 pipelined input + 2 pipelined output buffers), with the step count kept a
    multiple of the TensorCore count on multi-core chips."""
    max_tb = max(1, tile_budget_bytes // (4 * per_batch_bytes))
    target_tb = max(1, (4 << 20) // max(1, per_batch_bytes))
    tb = max(1, min(max_tb, target_tb, B))
    if num_cores >= 2 and B >= num_cores:
        # Want >= num_cores steps and (when possible) a multiple of num_cores so the
        # grid axis sharded by dimension_semantics=("parallel",) stays balanced.
        while tb > 1 and ((B + tb - 1) // tb) % num_cores != 0:
            tb -= 1
    return tb


def se_layer(x_nchw, w1, b1, w2, b2):
    """x_nchw: (B, C, H, W).  w1: (Hid, C), b1: (Hid,), w2: (C, Hid), b2: (C,)
    (PyTorch nn.Linear convention: weight is (out_features, in_features))."""
    B, C, H, W = x_nchw.shape
    Hid = w1.shape[0]
    HW = H * W
    dtype = x_nchw.dtype
    itemsize = jnp.dtype(dtype).itemsize

    # Flatten spatial onto the lane axis.  No padding: the last block dim equals the
    # full HW extent, which is exempt from the (8,128) divisibility rule.
    x_flat = x_nchw.reshape(B, C, HW)

    # Transpose weights once in glue so the kernel does y @ W (right-multiply).
    w1_t = w1.T.astype(jnp.float32)             # (C, Hid)
    w2_t = w2.T.astype(jnp.float32)             # (Hid, C)
    b1_2d = b1.reshape(1, Hid).astype(jnp.float32)
    b2_2d = b2.reshape(1, C).astype(jnp.float32)
    weight_bytes = 4 * (C * Hid + Hid + Hid * C + C)

    # ---- per-generation VMEM budgeting with real headroom ----
    # ~40 MiB on v7x (64 MiB/TC), ~80 MiB on v5e/v6e (128 MiB); leaves room for Mosaic
    # internal scratch and the f32 gate-path temporaries.
    vmem_cap, num_cores = _tpu_topology()
    vmem_limit = max(8 << 20, min(96 << 20, (vmem_cap * 5) // 8))
    tile_budget = max(1 << 20, vmem_limit - 2 * weight_bytes - (4 << 20))

    per_batch_bytes = C * HW * itemsize
    TB = _choose_tb(B, per_batch_bytes, tile_budget, num_cores)
    grid = (pl.cdiv(B, TB),)   # partial last block OK: rows are independent, OOB
                               # rows produce garbage that the boundary store drops.

    # Stopgap for huge feature maps where even one batch row can't be double-buffered
    # (e.g. C=2048, 56x56 f32 on v7x's 64 MiB/TC): single-buffer the x/out streams
    # instead of failing to compile.
    single_buffer = (TB == 1 and 4 * per_batch_bytes > tile_budget)
    # TODO(synk): replace the Buffered(1) stopgap with a two-pass kernel (pass 1: tiled
    # running max -> gate; pass 2: tiled x * gate) so huge maps stay at the HBM roofline.
    if single_buffer:
        x_spec = pl.BlockSpec((TB, C, HW), lambda b: (b, 0, 0),
                              pipeline_mode=pl.Buffered(1))
        o_spec = pl.BlockSpec((TB, C, HW), lambda b: (b, 0, 0),
                              pipeline_mode=pl.Buffered(1))
    else:
        x_spec = pl.BlockSpec((TB, C, HW), lambda b: (b, 0, 0))
        o_spec = pl.BlockSpec((TB, C, HW), lambda b: (b, 0, 0))

    # Advisory cost: this op is pure HBM streaming (unpadded traffic).
    cost = pl.CostEstimate(
        flops=4 * B * C * Hid + 2 * B * C * HW,      # two tiny GEMMs + max + scale mul
        transcendentals=B * C,                        # sigmoid
        bytes_accessed=2 * B * C * HW * itemsize + weight_bytes,
    )

    out_flat = pl.pallas_call(
        se_kernel,
        out_shape=jax.ShapeDtypeStruct((B, C, HW), dtype),
        grid_spec=pltpu.PrefetchScalarGridSpec(
            num_scalar_prefetch=0,
            grid=grid,
            in_specs=[
                x_spec,                                            # x (TB batches / step)
                pl.BlockSpec((C, Hid), lambda b: (0, 0)),          # W1^T (resident)
                pl.BlockSpec((1, Hid), lambda b: (0, 0)),          # b1
                pl.BlockSpec((Hid, C), lambda b: (0, 0)),          # W2^T
                pl.BlockSpec((1, C),   lambda b: (0, 0)),          # b2
            ],
            out_specs=o_spec,
        ),
        compiler_params=pltpu.CompilerParams(
            dimension_semantics=("parallel",),
            vmem_limit_bytes=vmem_limit,
        ),
        cost_estimate=cost,
    )(x_flat, w1_t, b1_2d, w2_t, b2_2d)

    return out_flat.reshape(B, C, H, W)


def se_layer_ref(x, w1, b1, w2, b2):
    """Pure-JAX reference mirroring the PyTorch forward."""
    B, C, H, W = x.shape
    y = jnp.max(x.reshape(B, C, -1), axis=-1)           # AdaptiveMaxPool2d(1)
    h = jnp.maximum(y @ w1.T + b1, 0.0)
    s = jax.nn.sigmoid(h @ w2.T + b2)
    return x * s[:, :, None, None]


if __name__ == "__main__":
    # Small shapes consistent with SELayer(channels=32, reduction=16) -> hidden = 2
    B, C, H, W = 2, 32, 16, 16
    reduction = 16
    Hid = C // reduction

    key = jax.random.PRNGKey(0)
    kx, k1, k2, k3, k4 = jax.random.split(key, 5)

    x = jax.random.normal(kx, (B, C, H, W), dtype=jnp.float32)
    # Deterministic synthetic parameters (PyTorch Linear shapes: (out, in))
    w1 = jax.random.normal(k1, (Hid, C), dtype=jnp.float32) * 0.1
    b1 = jax.random.normal(k2, (Hid,), dtype=jnp.float32) * 0.1
    w2 = jax.random.normal(k3, (C, Hid), dtype=jnp.float32) * 0.1
    b2 = jax.random.normal(k4, (C,), dtype=jnp.float32) * 0.1

    out = se_layer(x, w1, b1, w2, b2)
    out = jax.block_until_ready(out)

    ref = se_layer_ref(x, w1, b1, w2, b2)
    assert out.shape == (B, C, H, W)
    assert jnp.allclose(out, ref, atol=1e-5, rtol=1e-5), "mismatch vs reference"

    print("KERNEL_OK")
</pallas_src>

<mosaic_0001>
module attributes {stable_mosaic.version = 11 : i64} {
  func.func @se_kernel(%arg0: i32, %arg1: memref<2x32x256xf32, #tpu.memory_space<vmem>>, %arg2: memref<32x2xf32, #tpu.memory_space<vmem>>, %arg3: memref<1x2xf32, #tpu.memory_space<vmem>>, %arg4: memref<2x32xf32, #tpu.memory_space<vmem>>, %arg5: memref<1x32xf32, #tpu.memory_space<vmem>>, %arg6: memref<2x32x256xf32, #tpu.memory_space<vmem>>) attributes {dimension_semantics = [#tpu.dimension_semantics<parallel>], iteration_bounds = array<i64: 1>, scalar_prefetch = 0 : i64, scratch_operands = 0 : i64, tpu.core_type = #tpu.core_type<tc>, window_params = [{transform_indices = @transform_0, window_bounds = array<i64: 2, 32, 256>}, {pipeline_mode = #tpu.pipeline_mode<synchronous>, transform_indices = @transform_1, window_bounds = array<i64: 32, 2>}, {pipeline_mode = #tpu.pipeline_mode<synchronous>, transform_indices = @transform_2, window_bounds = array<i64: 1, 2>}, {pipeline_mode = #tpu.pipeline_mode<synchronous>, transform_indices = @transform_3, window_bounds = array<i64: 2, 32>}, {pipeline_mode = #tpu.pipeline_mode<synchronous>, transform_indices = @transform_4, window_bounds = array<i64: 1, 32>}, {transform_indices = @transform_5, window_bounds = array<i64: 2, 32, 256>}]} {
    %c0 = arith.constant 0 : index
    %c0_0 = arith.constant 0 : index
    %c0_1 = arith.constant 0 : index
    %0 = vector.load %arg1[%c0, %c0_0, %c0_1] : memref<2x32x256xf32, #tpu.memory_space<vmem>>, vector<2x32x256xf32>
    %cst = arith.constant dense<0xFF800000> : vector<2x32xf32>
    %1 = vector.multi_reduction <maximumf>, %0, %cst [2] : vector<2x32x256xf32> to vector<2x32xf32>
    %c0_2 = arith.constant 0 : index
    %c0_3 = arith.constant 0 : index
    %2 = vector.load %arg2[%c0_2, %c0_3] : memref<32x2xf32, #tpu.memory_space<vmem>>, vector<32x2xf32>
    %cst_4 = arith.constant dense<0.000000e+00> : vector<2x2xf32>
    %3 = tpu.matmul %1, %2, %cst_4 {dimension_numbers = #tpu.dot_dimension_numbers<[1], [0], [0], [1], [0, 0, 1, 1], [], []>} : vector<2x32xf32>, vector<32x2xf32>, vector<2x2xf32> -> vector<2x2xf32>
    %c0_5 = arith.constant 0 : index
    %c0_6 = arith.constant 0 : index
    %4 = vector.load %arg3[%c0_5, %c0_6] : memref<1x2xf32, #tpu.memory_space<vmem>>, vector<1x2xf32>
    %5 = vector.broadcast %4 : vector<1x2xf32> to vector<2x2xf32>
    %6 = arith.addf %3, %5 : vector<2x2xf32>
    %cst_7 = arith.constant 0.000000e+00 : f32
    %7 = vector.broadcast %cst_7 : f32 to vector<2x2xf32>
    %8 = arith.maximumf %6, %7 : vector<2x2xf32>
    %c0_8 = arith.constant 0 : index
    %c0_9 = arith.constant 0 : index
    %9 = vector.load %arg4[%c0_8, %c0_9] : memref<2x32xf32, #tpu.memory_space<vmem>>, vector<2x32xf32>
    %cst_10 = arith.constant dense<0.000000e+00> : vector<2x32xf32>
    %10 = tpu.matmul %8, %9, %cst_10 {dimension_numbers = #tpu.dot_dimension_numbers<[1], [0], [0], [1], [0, 0, 1, 1], [], []>} : vector<2x2xf32>, vector<2x32xf32>, vector<2x32xf32> -> vector<2x32xf32>
    %c0_11 = arith.constant 0 : index
    %c0_12 = arith.constant 0 : index
    %11 = vector.load %arg5[%c0_11, %c0_12] : memref<1x32xf32, #tpu.memory_space<vmem>>, vector<1x32xf32>
    %12 = vector.broadcast %11 : vector<1x32xf32> to vector<2x32xf32>
    %13 = arith.addf %10, %12 : vector<2x32xf32>
    %14 = arith.negf %13 : vector<2x32xf32>
    %15 = math.exp %14 : vector<2x32xf32>
    %cst_13 = arith.constant 1.000000e+00 : f32
    %16 = vector.broadcast %cst_13 : f32 to vector<2x32xf32>
    %17 = arith.addf %16, %15 : vector<2x32xf32>
    %18 = arith.divf %16, %17 : vector<2x32xf32>
    %c0_14 = arith.constant 0 : index
    %c0_15 = arith.constant 0 : index
    %c0_16 = arith.constant 0 : index
    %19 = vector.load %arg1[%c0_14, %c0_15, %c0_16] : memref<2x32x256xf32, #tpu.memory_space<vmem>>, vector<2x32x256xf32>
    %20 = vector.shape_cast %18 : vector<2x32xf32> to vector<2x32x1xf32>
    %21 = vector.broadcast %20 : vector<2x32x1xf32> to vector<2x32x256xf32>
    %22 = arith.mulf %19, %21 : vector<2x32x256xf32>
    %c0_17 = arith.constant 0 : index
    %c0_18 = arith.constant 0 : index
    %c0_19 = arith.constant 0 : index
    %23 = vector.load %arg6[%c0_17, %c0_18, %c0_19] : memref<2x32x256xf32, #tpu.memory_space<vmem>>, vector<2x32x256xf32>
    tpu.vector_store %arg6[%c0_17, %c0_18, %c0_19], %22 {strides = array<i32>} : memref<2x32x256xf32, #tpu.memory_space<vmem>>, vector<2x32x256xf32>,
    return
  }
  func.func @transform_0(%arg0: i32) -> (i32, i32, i32) {
    %c0_i32 = arith.constant 0 : i32
    %c0_i32_0 = arith.constant 0 : i32
    %c0_i32_1 = arith.constant 0 : i32
    return %arg0, %c0_i32, %c0_i32_0 : i32, i32, i32
  }
  func.func @transform_1(%arg0: i32) -> (i32, i32) {
    %c0_i32 = arith.constant 0 : i32
    %c0_i32_0 = arith.constant 0 : i32
    %c0_i32_1 = arith.constant 0 : i32
    return %c0_i32, %c0_i32_0 : i32, i32
  }
  func.func @transform_2(%arg0: i32) -> (i32, i32) {
    %c0_i32 = arith.constant 0 : i32
    %c0_i32_0 = arith.constant 0 : i32
    %c0_i32_1 = arith.constant 0 : i32
    return %c0_i32, %c0_i32_0 : i32, i32
  }
  func.func @transform_3(%arg0: i32) -> (i32, i32) {
    %c0_i32 = arith.constant 0 : i32
    %c0_i32_0 = arith.constant 0 : i32
    %c0_i32_1 = arith.constant 0 : i32
    return %c0_i32, %c0_i32_0 : i32, i32
  }
  func.func @transform_4(%arg0: i32) -> (i32, i32) {
    %c0_i32 = arith.constant 0 : i32
    %c0_i32_0 = arith.constant 0 : i32
    %c0_i32_1 = arith.constant 0 : i32
    return %c0_i32, %c0_i32_0 : i32, i32
  }
  func.func @transform_5(%arg0: i32) -> (i32, i32, i32) {
    %c0_i32 = arith.constant 0 : i32
    %c0_i32_0 = arith.constant 0 : i32
    %c0_i32_1 = arith.constant 0 : i32
    return %arg0, %c0_i32, %c0_i32_0 : i32, i32, i32
  }
}

</mosaic_0001>

<bundles_post_ra>
// kernel: tpu_custom_call.1
= control target key start
LH: loop header
LB: loop body
LE: loop exit
PB: predicated region body
PF: predicated region fallthrough
CT: control target
= control target key end

     0   :  { %10 = vsyncpa [#allocation3], 0  ;;  %s611_s0 = inlined_call_operand.hbm [shape: f32[2,32,256], index: 0, kind: input, shape index: {}]   ;;  %s612_s1 = inlined_call_operand.vmem [shape: f32[32,2], index: 1, kind: input, shape index: {}]   ;;  %s613_s2 = inlined_call_operand.vmem [shape: f32[1,2], index: 2, kind: input, shape index: {}]   ;;  %s614_s3 = inlined_call_operand.vmem [shape: f32[2,32], index: 3, kind: input, shape index: {}]   ;;  %s615_s4 = inlined_call_operand.vmem [shape: f32[1,32], index: 4, kind: input, shape index: {}]   ;;  %s616_s5 = inlined_call_operand.hbm [shape: f32[2,32,256], index: 5, kind: output, shape index: {}]  }
   0x1   :  { %11 = vsyncpa [#allocation4], 0  ;;  %s478_s18 = smov [#allocation2]  }
   0x2   :  { %s17_s19 = sshll.u32 %s478_s18, 4  ;;  %s18_s19 = int_to_ptr.vmem [resolvable:$true] %s17_s19 }
   0x3   :  { %s442_s20 = scalar_lea.vmem %s18_s19, 2048  ;;  %p447_p1 = scmp.lt.s32.totalorder %s18_s19, %s18_s19 }
   0x4   :  { %p443_p0 = scmp.ne.s32.totalorder %s18_s19, %s442_s20  ;;  %p448_p2 = scmp.lt.s32.totalorder %s442_s20, %s442_s20 }
   0x6   :  { %p449_p3 = por %p448_p2, %p447_p1 }
   0x8   :  { %p450_p4 = pnand %p449_p3, %p443_p0 }
   0xa   :  { %453 = shalt.err (!%p450_p4)
}
   0xb   :  { %s479_s21 = smov 256   ;;  %s480_s22 = smov 16  }
   0xc   :  { %23 = dma.hbm_to_vmem [thread:$0]  %s611_s0, 2048, %s18_s19, [#allocation3], %s479_s21, %s479_s21, %s480_s22  }
   0xd   :  { %474 = dma.done.wait [#allocation3], 2048  }
   0xe   :  { %475 = vsyncadd [#allocation3], 4294965248  ;;  %v520_v0 = vld [vmem:[#allocation2 + $0x40] sm:$0xff]  ;;  %v522_v1 = vld [vmem:[#allocation2 + $0x48] sm:$0xff]  ;;  %v481_v24 = vmov 0.0   ;;  %vm482_vm0 = vmmov 0   ;;  %v94_v29 = vlaneseq }
   0xf   :  { %v524_v2 = vld [vmem:[#allocation2] sm:$0xff]  ;;  %v63_v3 = vmax.f32 %v520_v0, %v522_v1  ;;  %v528_v4 = vld [vmem:[#allocation2 + $0x8] sm:$0xff]  ;;  %v530_v5 = vld [vmem:[#allocation2 + $0x50] sm:$0xff]  ;;  %408 = vmatprep.subr.mxu0 %v481_v24  ;;  %419 = vmatprep.subr.mxu1 %v481_v24  ;;  %vm105_vm1 = vcmask 130112   ;;  %vm112_vm2 = vcmask 195712   ;;  %vm119_vm3 = vcmask 261312  }
  0x10   :  { %v532_v6 = vld [vmem:[#allocation2 + $0x58] sm:$0xff]  ;;  %v51_v7 = vmax.f32 %v524_v2, %v528_v4  ;;  %v536_v8 = vld [vmem:[#allocation2 + $0x10] sm:$0xff]  ;;  %v544_v12 = vld [vmem:[#allocation2 + $0x60] sm:$0xff]  ;;  %416 = vmatprep.mubr.msk.f32.mxu0 %vm482_vm0, %v481_v24  ;;  %421 = vmatprep.mubr.msk.f32.mxu1 %vm482_vm0, %v481_v24  ;;  %v95_v30 = vand.u32 127, %v94_v29  ;;  %v97_v35 = vshrl.u32 %v94_v29, 7  ;;  %vm140_vm4 = vcmask 1041409  }
  0x11   :  { %v538_v9 = vld [vmem:[#allocation2 + $0x18] sm:$0xff]  ;;  %64 = vmax.xlane.f32.xlu1 %v63_v3  ;;  %v66_v10 = vmax.f32 %v530_v5, %v532_v6  ;;  %v546_v13 = vld [vmem:[#allocation2 + $0x68] sm:$0xff]  ;;  %v548_v14 = vld [vmem:[#allocation2 + $0x20] sm:$0xff]  ;;  %vm142_vm5 = vcmask 261120   ;;  %vm228_vm6 = vcmask 1041408   ;;  %vm224_vm7 = vcmask 15360  }
  0x12   :  { %52 = vmax.xlane.f32.xlu0 %v51_v7  ;;  %v54_v11 = vmax.f32 %v536_v8, %v538_v9  ;;  %v550_v15 = vld [vmem:[#allocation2 + $0x28] sm:$0xff]  ;;  %v69_v16 = vmax.f32 %v544_v12, %v546_v13  ;;  %v556_v18 = vld [vmem:[#allocation2 + $0x70] sm:$0xff]  ;;  %v558_v19 = vld [vmem:[#allocation2 + $0x78] sm:$0xff]  ;;  %v100_v33 = vadd.s32 4294967288, %v95_v30  ;;  %v107_v34 = vadd.s32 4294967280, %v95_v30 }
  0x13   :  { %v57_v17 = vmax.f32 %v548_v14, %v550_v15  ;;  %v560_v20 = vld [vmem:[#allocation2 + $0x30] sm:$0xff]  ;;  %v562_v21 = vld [vmem:[#allocation2 + $0x38] sm:$0xff]  ;;  %v72_v22 = vmax.f32 %v556_v18, %v558_v19  ;;  %v76_v27 = vld [vmem:[%s612_s1 + $0x8] sm:$0xff]  ;;  %v114_v39 = vadd.s32 4294967272, %v95_v30  ;;  %v98_v41 = vsub.s32 %v95_v30, %v97_v35 }
  0x14   :  { %v60_v23 = vmax.f32 %v560_v20, %v562_v21  ;;  %v78_v25 = vld [vmem:[%s612_s1 + $0x18] sm:$0xff]  ;;  %v77_v26 = vld [vmem:[%s612_s1 + $0x10] sm:$0xff]  ;;  %v75_v28 = vld [vmem:[%s612_s1] sm:$0xff]  ;;  %v103_v37 = vsub.s32 %v100_v33, %v97_v35  ;;  %v110_v40 = vsub.s32 %v107_v34, %v97_v35  ;;  %v329_v30 = vsub.s32 1, %v97_v35 }
  0x15   :  { %67 = vmax.xlane.f32.xlu1 %v66_v10  ;;  %409 = vmatpush3.msra.mxu0 %v78_v25  ;;  %v117_v45 = vsub.s32 %v114_v39, %v97_v35  ;;  %v216_v62 = vld [vmem:[%s614_s3] sm:$0x3] }
  0x16   :  { %55 = vmax.xlane.f32.xlu0 %v54_v11  ;;  %410 = vmatprep.subr.mxu0 %v481_v24  ;;  %v395_v63 = vld [vmem:[%s613_s2] ss:$0 sm:$0xff]  ;;  %s483_s2 = smov [#allocation5]  }
  0x17   :  { %411 = vmatpush3.msra.mxu0 %v77_v26  ;;  %420 = vmatpush3.msk.msra.mxu1 %vm228_vm6, %v216_v62  ;;  %s383_s3 = sshll.u32 %s483_s2, 4  ;;  %s384_s3 = int_to_ptr.vmem [resolvable:$true] %s383_s3 }
  0x18   :  { %412 = vmatprep.subr.mxu0 %v481_v24  ;;  %p459_p6 = scmp.lt.s32.totalorder %s384_s3, %s384_s3 }
  0x19   :  { %70 = vmax.xlane.f32.xlu1 %v69_v16  ;;  %413 = vmatpush3.msra.mxu0 %v76_v27  ;;  %v397_v16 = vld [vmem:[%s615_s4] ss:$0 sm:$0xff]  ;;  %v310_v27 = vsub.s32 0, %v97_v35  ;;  %s454_s4 = scalar_lea.vmem %s384_s3, 2048 }
  0x1a   :  { %58 = vmax.xlane.f32.xlu0 %v57_v17  ;;  %414 = vmatprep.subr.mxu0 %v481_v24  ;;  %p455_p5 = scmp.ne.s32.totalorder %s384_s3, %s454_s4  ;;  %p460_p7 = scmp.lt.s32.totalorder %s454_s4, %s454_s4 }
  0x1b   :  { %415 = vmatpush3.msra.mxu0 %v75_v28 }
  0x1c   :  { %p461_p8 = por %p460_p7, %p459_p6 }
  0x1d   :  { %73 = vmax.xlane.f32.xlu1 %v72_v22 }
  0x1e   :  { %61 = vmax.xlane.f32.xlu0 %v60_v23  ;;  %p462_p9 = pnand %p461_p8, %p455_p5 }
  0x9a   :  { %v65_v31 = vpop.xlane.xlu1 %64 }
  0x9b   :  { %v53_v32 = vpop.xlane.xlu0 %52  ;;  %v124_v48 = vrot.slane %v65_v31, %v98_v41 }
  0x9c   :  { %v99_v50 = vrot.slane %v53_v32, %v98_v41 }
  0x9e   :  { %v68_v36 = vpop.xlane.xlu1 %67 }
  0x9f   :  { %v56_v38 = vpop.xlane.xlu0 %55  ;;  %v128_v43 = vrot.slane %v68_v36, %v103_v37 }
  0xa0   :  { %v104_v46 = vrot.slane %v56_v38, %v103_v37 }
  0xa1   :  { %v129_v52 = vsel %vm105_vm1, %v128_v43, %v124_v48 }
  0xa2   :  { %v71_v42 = vpop.xlane.xlu1 %70  ;;  %v106_v55 = vsel %vm105_vm1, %v104_v46, %v99_v50 }
  0xa3   :  { %v59_v44 = vpop.xlane.xlu0 %58  ;;  %v133_v47 = vrot.slane %v71_v42, %v110_v40 }
  0xa4   :  { %v111_v49 = vrot.slane %v59_v44, %v110_v40 }
  0xa5   :  { %v134_v56 = vsel %vm112_vm2, %v133_v47, %v129_v52 }
  0xa6   :  { %v74_v51 = vpop.xlane.xlu1 %73  ;;  %v113_v58 = vsel %vm112_vm2, %v111_v49, %v106_v55 }
  0xa7   :  { %v138_v53 = vrot.slane %v74_v51, %v117_v45  ;;  %v62_v54 = vpop.xlane.xlu0 %61 }
  0xa8   :  { %v118_v57 = vrot.slane %v62_v54, %v117_v45 }
  0xa9   :  { %v139_v59 = vsel %vm119_vm3, %v138_v53, %v134_v56 }
  0xaa   :  { %v120_v60 = vsel %vm119_vm3, %v118_v57, %v113_v58 }
  0xab   :  { %v141_v61 = vsel %vm140_vm4, %v139_v59, %v120_v60 }
  0xac   :  { %417 = vmatmul.mubr.msk.f32.vlgmr.msra.gmra.mxu0 %vm142_vm5, %v141_v61 }
 0x16c   :  { %v211_v3 = vpop.f32.mrf.mxu0 }
 0x16d   :  { %v212_v7 = vadd.f32 %v395_v63, %v211_v3 }
 0x16e   :  { %v418_v10 = vpop.f32.mrf.mxu0 }
 0x16f   :  { %v215_v11 = vmax.f32 %v212_v7, 0.0 }
 0x171   :  { %422 = vmatmul.mubr.msk.f32.vlgmr.msra.gmra.mxu1 %vm224_vm7, %v215_v11 }
 0x231   :  { %v298_v17 = vpop.f32.mrf.mxu1 }
 0x232   :  { %v299_v22 = vadd.f32 %v397_v16, %v298_v17 }
 0x233   :  { %v423_v23 = vpop.f32.mrf.mxu1 }
 0x234   :  { %v400_v24 = vmul.f32 -1.442695, %v299_v22 }
 0x236   :  { %430 = vpow2.f32 %v400_v24 }
 0x243   :  { %v431_v25 = vpop.eup %430 }
 0x244   :  { %v305_v26 = vadd.f32 1.0, %v431_v25 }
 0x246   :  { %432 = vrcp.f32 %v305_v26 }
 0x253   :  { %v433_v28 = vpop.eup %432 }
 0x254   :  { %v311_v29 = vrot.slane %v433_v28, %v310_v27  ;;  %v330_v31 = vrot.slane %v433_v28, %v329_v30 }
 0x256   :  { %317 = vbcast.lane.b32.xlu1 %v311_v29, 264  ;;  %313 = vbcast.lane.b32.xlu0 %v311_v29, 256 }
 0x25a   :  { %321 = vbcast.lane.b32.xlu1 %v311_v29, 272  ;;  %332 = vbcast.lane.b32.xlu0 %v330_v31, 256 }
 0x25e   :  { %325 = vbcast.lane.b32.xlu1 %v311_v29, 280  ;;  %340 = vbcast.lane.b32.xlu0 %v330_v31, 272 }
 0x262   :  { %336 = vbcast.lane.b32.xlu1 %v330_v31, 264 }
 0x266   :  { %344 = vbcast.lane.b32.xlu1 %v330_v31, 280 }
 0x2c8   :  { %v318_v32 = vpop.permute.xlu1 %317  ;;  %v314_v33 = vpop.permute.xlu0 %313 }
 0x2c9   :  { %v348_v34 = vmul.f32 %v318_v32, %v536_v8  ;;  %v349_v36 = vmul.f32 %v318_v32, %v538_v9  ;;  %v346_v37 = vmul.f32 %v314_v33, %v524_v2  ;;  %v347_v38 = vmul.f32 %v314_v33, %v528_v4 }
 0x2cb   :  { %364 = vst [vmem:[#allocation5 + $0x10] sm:$0xff] %v348_v34  ;;  %365 = vst [vmem:[#allocation5 + $0x18] sm:$0xff] %v349_v36 }
 0x2cc   :  { %362 = vst [vmem:[#allocation5] sm:$0xff] %v346_v37  ;;  %363 = vst [vmem:[#allocation5 + $0x8] sm:$0xff] %v347_v38  ;;  %v322_v35 = vpop.permute.xlu1 %321  ;;  %v333_v39 = vpop.permute.xlu0 %332 }
 0x2cd   :  { %v350_v40 = vmul.f32 %v322_v35, %v548_v14  ;;  %v351_v41 = vmul.f32 %v322_v35, %v550_v15  ;;  %v354_v42 = vmul.f32 %v333_v39, %v520_v0  ;;  %v355_v8 = vmul.f32 %v333_v39, %v522_v1 }
 0x2cf   :  { %366 = vst [vmem:[#allocation5 + $0x20] sm:$0xff] %v350_v40  ;;  %367 = vst [vmem:[#allocation5 + $0x28] sm:$0xff] %v351_v41 }
 0x2d0   :  { %370 = vst [vmem:[#allocation5 + $0x40] sm:$0xff] %v354_v42  ;;  %371 = vst [vmem:[#allocation5 + $0x48] sm:$0xff] %v355_v8  ;;  %v326_v2 = vpop.permute.xlu1 %325  ;;  %v341_v4 = vpop.permute.xlu0 %340 }
 0x2d1   :  { %v352_v9 = vmul.f32 %v326_v2, %v560_v20  ;;  %v353_v43 = vmul.f32 %v326_v2, %v562_v21  ;;  %v358_v44 = vmul.f32 %v341_v4, %v544_v12  ;;  %v359_v14 = vmul.f32 %v341_v4, %v546_v13 }
 0x2d3   :  { %368 = vst [vmem:[#allocation5 + $0x30] sm:$0xff] %v352_v9  ;;  %369 = vst [vmem:[#allocation5 + $0x38] sm:$0xff] %v353_v43 }
 0x2d4   :  { %374 = vst [vmem:[#allocation5 + $0x60] sm:$0xff] %v358_v44  ;;  %375 = vst [vmem:[#allocation5 + $0x68] sm:$0xff] %v359_v14  ;;  %v337_v0 = vpop.permute.xlu1 %336 }
 0x2d5   :  { %v356_v1 = vmul.f32 %v337_v0, %v530_v5  ;;  %v357_v15 = vmul.f32 %v337_v0, %v532_v6 }
 0x2d7   :  { %372 = vst [vmem:[#allocation5 + $0x50] sm:$0xff] %v356_v1  ;;  %373 = vst [vmem:[#allocation5 + $0x58] sm:$0xff] %v357_v15 }
 0x2d8   :  { %v345_v20 = vpop.permute.xlu1 %344 }
 0x2d9   :  { %v360_v21 = vmul.f32 %v345_v20, %v556_v18  ;;  %v361_v12 = vmul.f32 %v345_v20, %v558_v19 }
 0x2db   :  { %376 = vst [vmem:[#allocation5 + $0x70] sm:$0xff] %v360_v21  ;;  %377 = vst [vmem:[#allocation5 + $0x78] sm:$0xff] %v361_v12 }
 0x2dc   :  { %465 = shalt.err (!%p462_p9)
}
 0x2dd   :  { %389 = dma.vmem_to_hbm [thread:$0]  %s384_s3, 2048, %s616_s5, [#allocation4], %s479_s21, %s479_s21, %s480_s22  }
 0x2de   :  { %476 = dma.done.wait [#allocation4], 2048  }
 0x2df   :  { %477 = vsyncadd [#allocation4], 4294965248 }
 0x2e0   :  { %393 = vsyncpa [#allocation3], 1 }
 0x2e1   :  { %394 = vsyncpa [#allocation4], 1 }

</bundles_post_ra>
